<compile_context>
chip_gen: v6e
topology: v6e:2x2x1
jax: 0.10.0
libtpu: 0.0.40
codegen_flags: <defaults>
</compile_context>

<pallas_src>
import functools

import jax
import jax.numpy as jnp
from jax.experimental import pallas as pl
from jax.experimental.pallas import tpu as pltpu

NEG_SLOPE = 0.05


# ---------------------------------------------------------------------------
# Kernel
# ---------------------------------------------------------------------------
def _srb_kernel(xc_ref, xu_ref, xd_ref, m_ref, b_ref, o_ref):
    """One (image n, row-strip s) grid step.

    xc_ref: (1, TH, WC)  current strip, lane-fused rows (WC = W*C); also residual
    xu_ref: (1, 8,  WC)  8-row block whose LAST row is the row above the strip
    xd_ref: (1, 8,  WC)  8-row block whose FIRST row is the row below the strip
    m_ref : (3, WC, WC)  banded tap matrices (ky = 0,1,2), bf16, VMEM-resident
    b_ref : (1, WC)      conv bias tiled along W, f32, VMEM-resident
    o_ref : (1, TH, WC)  output strip
    """
    s = pl.program_id(1)
    n_strips = pl.num_programs(1)

    xc = xc_ref[0]                                            # (TH, WC)

    # Halo rows; zero them at the image boundary (top of strip 0 / bottom of
    # the last strip) -> implements the conv's zero "same" padding along H.
    top = xu_ref[0][7:8, :] * (s > 0).astype(xc.dtype)              # (1, WC)
    bot = xd_ref[0][0:1, :] * (s < n_strips - 1).astype(xc.dtype)   # (1, WC)

    # Vertically shifted row views (small in-VMEM sublane shifts only — no
    # padded copies, no strided slices of a (H+2, W+2, C) block).
    x_up = jnp.concatenate([top, xc[:-1, :]], axis=0)   # row h-1 for every h
    x_dn = jnp.concatenate([xc[1:, :], bot], axis=0)    # row h+1 for every h

    # 3 MXU matmuls with K = W*C, bf16 operands, f32 accumulation.  The
    # horizontal taps, W zero-padding and channel mixing live in m_ref.
    mt = m_ref.dtype
    acc = jnp.dot(x_up.astype(mt), m_ref[0], preferred_element_type=jnp.float32)
    acc += jnp.dot(xc.astype(mt), m_ref[1], preferred_element_type=jnp.float32)
    acc += jnp.dot(x_dn.astype(mt), m_ref[2], preferred_element_type=jnp.float32)

    # Bias + residual + LeakyReLU(0.05), all in f32 (v5e-safe epilogue).
    res = acc + b_ref[...] + xc.astype(jnp.float32)
    out = jnp.where(res >= 0, res, NEG_SLOPE * res)
    o_ref[0] = out.astype(o_ref.dtype)


# ---------------------------------------------------------------------------
# Host-side parameter preparation (runs once per weight / width)
# ---------------------------------------------------------------------------
def _build_tap_matrices(weight_oihw, bias, width, mxu_dtype):
    """(Cout,Cin,3,3) conv weight -> (3, W*Cin, W*Cout) banded tap matrices.

    M[ky][w_src*Cin + ci, w_dst*Cout + co] = weight[co, ci, ky, w_src-w_dst+1]
    when |w_src - w_dst| <= 1, else 0.  A single matmul against a lane-fused
    row therefore applies all three horizontal taps *and* the channel mixing,
    with zero "same" padding along W built in structurally.
    """
    c_out, c_in, kh, kw = weight_oihw.shape
    assert (kh, kw) == (3, 3), "SRB uses a 3x3 convolution"
    wt = jnp.transpose(weight_oihw, (2, 3, 1, 0))           # (ky, kx, Cin, Cout)
    w_src = jnp.arange(width)[:, None]
    w_dst = jnp.arange(width)[None, :]
    kx = w_src - w_dst + 1                                   # (W, W)
    valid = ((kx >= 0) & (kx <= 2)).astype(wt.dtype)
    taps = wt[:, jnp.clip(kx, 0, 2)]                         # (3, W, W, Cin, Cout)
    taps = taps * valid[None, :, :, None, None]
    m = jnp.transpose(taps, (0, 1, 3, 2, 4)).reshape(3, width * c_in, width * c_out)
    b_tiled = jnp.tile(bias.astype(jnp.float32), width).reshape(1, width * c_out)
    return m.astype(mxu_dtype), b_tiled


def _pick_strip_height(H, WC, itemsize, budget_bytes=6 * 1024 * 1024):
    """Largest multiple-of-8 strip height dividing H whose double-buffered
    input + output strips fit `budget_bytes` (conservative wrt v7x 64 MiB)."""
    if H % 8 != 0:
        return H
    per_row = WC * itemsize
    max_rows = max(8, budget_bytes // (4 * per_row) - 16)   # 2 bufs x (in + out)
    best = 8
    for cand in range(8, H + 1, 8):
        if H % cand == 0 and cand <= max_rows:
            best = cand
    return best


# ---------------------------------------------------------------------------
# Forward wrappers
# ---------------------------------------------------------------------------
@functools.partial(jax.jit, static_argnames=("tile_h", "mxu_dtype"))
def srb_forward_nhwc(x_nhwc, weight_oihw, bias, *, tile_h=None,
                     mxu_dtype=jnp.bfloat16):
    """SRB forward, NHWC layout.  x: (N,H,W,C), weight: (C,C,3,3), bias: (C,)."""
    N, H, W, C = x_nhwc.shape
    WC = W * C

    # Lane-fused view (free, bitcast-compatible reshape): lane dim = W*C.
    x2 = x_nhwc.reshape(N, H, WC)
    m, b_tiled = _build_tap_matrices(weight_oihw, bias, W, mxu_dtype)

    if tile_h is None:
        tile_h = _pick_strip_height(H, WC, x_nhwc.dtype.itemsize)
    if H % 8 != 0 or tile_h % 8 != 0 or H % tile_h != 0:
        # TODO(synk): masked tail strips for H not a multiple of 8 / tile_h.
        raise ValueError(f"H={H} must be a multiple of 8 and of tile_h={tile_h}")
    if WC > 1024:
        # TODO(synk): for large W*C switch to per-tap (K=C) contraction with
        # channels on the lane axis instead of banded (W*C, W*C) matrices.
        raise ValueError("lane-fused tap matrices get too large for W*C > 1024")

    n_strips = H // tile_h
    th8 = tile_h // 8
    h8_last = H // 8 - 1

    grid_spec = pltpu.PrefetchScalarGridSpec(
        num_scalar_prefetch=0,
        grid=(N, n_strips),
        in_specs=[
            # Current strip (single read; also the residual source).
            # If DMA is still exposed, pipeline_mode=pl.Buffered(3) here.
            pl.BlockSpec((1, tile_h, WC), lambda n, s: (n, s, 0)),
            # 8-row block ending on the row just above the strip (clamped).
            pl.BlockSpec((1, 8, WC),
                         lambda n, s: (n, jnp.maximum(s * th8 - 1, 0), 0)),
            # 8-row block starting on the row just below the strip (clamped).
            pl.BlockSpec((1, 8, WC),
                         lambda n, s: (n, jnp.minimum((s + 1) * th8, h8_last), 0)),
            # Tap matrices + bias: constant index -> stay VMEM-resident.
            pl.BlockSpec((3, WC, WC), lambda n, s: (0, 0, 0)),
            pl.BlockSpec((1, WC), lambda n, s: (0, 0)),
        ],
        out_specs=pl.BlockSpec((1, tile_h, WC), lambda n, s: (n, s, 0)),
    )

    out2 = pl.pallas_call(
        _srb_kernel,
        out_shape=jax.ShapeDtypeStruct((N, H, WC), x_nhwc.dtype),
        grid_spec=grid_spec,
        compiler_params=pltpu.CompilerParams(
            dimension_semantics=("parallel", "parallel"),  # megacore on v7x
            vmem_limit_bytes=48 * 1024 * 1024,             # explicit; < v7x 64 MiB
        ),
    )(x2, x2, x2, m, b_tiled)

    return out2.reshape(N, H, W, C)


def srb_forward_nchw(x_nchw, weight_oihw, bias, **kwargs):
    """Drop-in PyTorch-layout adapter.  NOTE: the two activation transposes
    below are full HBM passes done by XLA; keep the model NHWC end-to-end
    (srb_forward_nhwc) to avoid them."""
    x_nhwc = jnp.transpose(x_nchw, (0, 2, 3, 1))
    out = srb_forward_nhwc(x_nhwc, weight_oihw, bias, **kwargs)
    return jnp.transpose(out, (0, 3, 1, 2))


# ---------------------------------------------------------------------------
# Pure-JAX reference (matches the PyTorch forward)
# ---------------------------------------------------------------------------
def _reference_nhwc(x_nhwc, weight_oihw, bias, matmul_dtype=None):
    """With matmul_dtype=jnp.bfloat16 the conv operands are rounded to bf16
    (f32 accumulation), matching the kernel's MXU precision exactly."""
    x_mm, w_mm = x_nhwc, weight_oihw
    if matmul_dtype is not None:
        x_mm = x_mm.astype(matmul_dtype).astype(jnp.float32)
        w_mm = w_mm.astype(matmul_dtype).astype(jnp.float32)
    w_hwio = jnp.transpose(w_mm, (2, 3, 1, 0))
    conv = jax.lax.conv_general_dilated(
        x_mm, w_hwio, window_strides=(1, 1), padding=((1, 1), (1, 1)),
        dimension_numbers=("NHWC", "HWIO", "NHWC"),
        precision=jax.lax.Precision.HIGHEST)
    out = conv + bias.astype(jnp.float32) + x_nhwc
    return jnp.where(out >= 0, out, NEG_SLOPE * out)


if __name__ == "__main__":
    N, C, H, W = 2, 4, 16, 16

    key = jax.random.PRNGKey(0)
    k_x, k_w, k_b = jax.random.split(key, 3)

    x_nhwc = jax.random.normal(k_x, (N, H, W, C), dtype=jnp.float32)
    fan_in = C * 3 * 3
    bound = float(fan_in) ** -0.5
    weight = jax.random.uniform(k_w, (C, C, 3, 3), jnp.float32, -bound, bound)
    bias = jax.random.uniform(k_b, (C,), jnp.float32, -bound, bound)

    # --- primary NHWC path, multi-strip (exercises the H-halo machinery) ---
    out = jax.block_until_ready(srb_forward_nhwc(x_nhwc, weight, bias, tile_h=8))
    assert out.shape == (N, H, W, C) and out.dtype == x_nhwc.dtype

    ref_matched = _reference_nhwc(x_nhwc, weight, bias, matmul_dtype=jnp.bfloat16)
    ref_f32 = _reference_nhwc(x_nhwc, weight, bias)
    err_matched = float(jnp.max(jnp.abs(out - ref_matched)))
    err_f32 = float(jnp.max(jnp.abs(out - ref_f32)))
    # Tight check against the precision-matched (bf16 operands, f32 acc) ref.
    assert err_matched < 1e-3, f"mismatch vs bf16-matched reference: {err_matched}"
    # Loose sanity check against the pure-f32 reference (bf16 rounding headroom).
    assert err_f32 < 1e-1, f"mismatch vs f32 reference: {err_f32}"

    # --- NCHW (PyTorch layout) drop-in adapter, auto strip height ---
    x_nchw = jnp.transpose(x_nhwc, (0, 3, 1, 2))
    out_nchw = jax.block_until_ready(srb_forward_nchw(x_nchw, weight, bias))
    err_nchw = float(jnp.max(jnp.abs(
        out_nchw - jnp.transpose(ref_matched, (0, 3, 1, 2)))))
    assert err_nchw < 1e-3, f"NCHW adapter mismatch: {err_nchw}"

    print("KERNEL_OK")
</pallas_src>

<mosaic_0001>
module attributes {stable_mosaic.version = 11 : i64} {
  func.func @_srb_kernel(%arg0: i32, %arg1: i32, %arg2: memref<1x8x64xf32, #tpu.memory_space<vmem>>, %arg3: memref<1x8x64xf32, #tpu.memory_space<vmem>>, %arg4: memref<1x8x64xf32, #tpu.memory_space<vmem>>, %arg5: memref<3x64x64xbf16, #tpu.memory_space<vmem>>, %arg6: memref<1x64xf32, #tpu.memory_space<vmem>>, %arg7: memref<1x8x64xf32, #tpu.memory_space<vmem>>) attributes {dimension_semantics = [#tpu.dimension_semantics<parallel>, #tpu.dimension_semantics<parallel>], iteration_bounds = array<i64: 2, 2>, scalar_prefetch = 0 : i64, scratch_operands = 0 : i64, tpu.core_type = #tpu.core_type<tc>, window_params = [{transform_indices = @transform_0, window_bounds = array<i64: 1, 8, 64>}, {transform_indices = @transform_1, window_bounds = array<i64: 1, 8, 64>}, {transform_indices = @transform_2, window_bounds = array<i64: 1, 8, 64>}, {pipeline_mode = #tpu.pipeline_mode<synchronous>, transform_indices = @transform_3, window_bounds = array<i64: 3, 64, 64>}, {pipeline_mode = #tpu.pipeline_mode<synchronous>, transform_indices = @transform_4, window_bounds = array<i64: 1, 64>}, {transform_indices = @transform_5, window_bounds = array<i64: 1, 8, 64>}]} {
    %c0 = arith.constant 0 : index
    %c0_0 = arith.constant 0 : index
    %c0_1 = arith.constant 0 : index
    %0 = vector.load %arg2[%c0, %c0_0, %c0_1] : memref<1x8x64xf32, #tpu.memory_space<vmem>>, vector<1x8x64xf32>
    %1 = vector.shape_cast %0 : vector<1x8x64xf32> to vector<8x64xf32>
    %c0_2 = arith.constant 0 : index
    %c0_3 = arith.constant 0 : index
    %c0_4 = arith.constant 0 : index
    %2 = vector.load %arg3[%c0_2, %c0_3, %c0_4] : memref<1x8x64xf32, #tpu.memory_space<vmem>>, vector<1x8x64xf32>
    %3 = vector.shape_cast %2 : vector<1x8x64xf32> to vector<8x64xf32>
    %4 = vector.extract_strided_slice %3 {offsets = [7, 0], sizes = [1, 64], strides = [1, 1]} : vector<8x64xf32> to vector<1x64xf32>
    %c0_i32 = arith.constant 0 : i32
    %5 = arith.cmpi sgt, %arg1, %c0_i32 : i32
    %6 = arith.extui %5 : i1 to i32
    %7 = arith.sitofp %6 : i32 to f32
    %8 = vector.broadcast %7 : f32 to vector<1x64xf32>
    %9 = arith.mulf %4, %8 : vector<1x64xf32>
    %c0_5 = arith.constant 0 : index
    %c0_6 = arith.constant 0 : index
    %c0_7 = arith.constant 0 : index
    %10 = vector.load %arg4[%c0_5, %c0_6, %c0_7] : memref<1x8x64xf32, #tpu.memory_space<vmem>>, vector<1x8x64xf32>
    %11 = vector.shape_cast %10 : vector<1x8x64xf32> to vector<8x64xf32>
    %12 = vector.extract_strided_slice %11 {offsets = [0, 0], sizes = [1, 64], strides = [1, 1]} : vector<8x64xf32> to vector<1x64xf32>
    %c1_i32 = arith.constant 1 : i32
    %13 = arith.cmpi slt, %arg1, %c1_i32 : i32
    %14 = arith.extui %13 : i1 to i32
    %15 = arith.sitofp %14 : i32 to f32
    %16 = vector.broadcast %15 : f32 to vector<1x64xf32>
    %17 = arith.mulf %12, %16 : vector<1x64xf32>
    %18 = vector.extract_strided_slice %1 {offsets = [0, 0], sizes = [7, 64], strides = [1, 1]} : vector<8x64xf32> to vector<7x64xf32>
    %19 = tpu.concatenate %9, %18 in 0 : vector<1x64xf32>, vector<7x64xf32> -> vector<8x64xf32>
    %20 = vector.extract_strided_slice %1 {offsets = [1, 0], sizes = [7, 64], strides = [1, 1]} : vector<8x64xf32> to vector<7x64xf32>
    %21 = tpu.concatenate %20, %17 in 0 : vector<7x64xf32>, vector<1x64xf32> -> vector<8x64xf32>
    %22 = arith.truncf %19 : vector<8x64xf32> to vector<8x64xbf16>
    %c0_8 = arith.constant 0 : index
    %c0_9 = arith.constant 0 : index
    %c0_10 = arith.constant 0 : index
    %23 = vector.load %arg5[%c0_8, %c0_9, %c0_10] : memref<3x64x64xbf16, #tpu.memory_space<vmem>>, vector<1x64x64xbf16>
    %24 = vector.shape_cast %23 : vector<1x64x64xbf16> to vector<64x64xbf16>
    %cst = arith.constant dense<0.000000e+00> : vector<8x64xf32>
    %25 = tpu.matmul %22, %24, %cst {dimension_numbers = #tpu.dot_dimension_numbers<[1], [0], [0], [1], [0, 0, 1, 1], [], []>} : vector<8x64xbf16>, vector<64x64xbf16>, vector<8x64xf32> -> vector<8x64xf32>
    %26 = arith.truncf %1 : vector<8x64xf32> to vector<8x64xbf16>
    %c1 = arith.constant 1 : index
    %c0_11 = arith.constant 0 : index
    %c0_12 = arith.constant 0 : index
    %27 = vector.load %arg5[%c1, %c0_11, %c0_12] : memref<3x64x64xbf16, #tpu.memory_space<vmem>>, vector<1x64x64xbf16>
    %28 = vector.shape_cast %27 : vector<1x64x64xbf16> to vector<64x64xbf16>
    %cst_13 = arith.constant dense<0.000000e+00> : vector<8x64xf32>
    %29 = tpu.matmul %26, %28, %cst_13 {dimension_numbers = #tpu.dot_dimension_numbers<[1], [0], [0], [1], [0, 0, 1, 1], [], []>} : vector<8x64xbf16>, vector<64x64xbf16>, vector<8x64xf32> -> vector<8x64xf32>
    %30 = arith.addf %25, %29 : vector<8x64xf32>
    %31 = arith.truncf %21 : vector<8x64xf32> to vector<8x64xbf16>
    %c2 = arith.constant 2 : index
    %c0_14 = arith.constant 0 : index
    %c0_15 = arith.constant 0 : index
    %32 = vector.load %arg5[%c2, %c0_14, %c0_15] : memref<3x64x64xbf16, #tpu.memory_space<vmem>>, vector<1x64x64xbf16>
    %33 = vector.shape_cast %32 : vector<1x64x64xbf16> to vector<64x64xbf16>
    %cst_16 = arith.constant dense<0.000000e+00> : vector<8x64xf32>
    %34 = tpu.matmul %31, %33, %cst_16 {dimension_numbers = #tpu.dot_dimension_numbers<[1], [0], [0], [1], [0, 0, 1, 1], [], []>} : vector<8x64xbf16>, vector<64x64xbf16>, vector<8x64xf32> -> vector<8x64xf32>
    %35 = arith.addf %30, %34 : vector<8x64xf32>
    %c0_17 = arith.constant 0 : index
    %c0_18 = arith.constant 0 : index
    %36 = vector.load %arg6[%c0_17, %c0_18] : memref<1x64xf32, #tpu.memory_space<vmem>>, vector<1x64xf32>
    %37 = vector.broadcast %36 : vector<1x64xf32> to vector<8x64xf32>
    %38 = arith.addf %35, %37 : vector<8x64xf32>
    %39 = arith.addf %38, %1 : vector<8x64xf32>
    %cst_19 = arith.constant 0.000000e+00 : f32
    %40 = vector.broadcast %cst_19 : f32 to vector<8x64xf32>
    %41 = arith.cmpf oge, %39, %40 : vector<8x64xf32>
    %cst_20 = arith.constant 5.000000e-02 : f32
    %42 = vector.broadcast %cst_20 : f32 to vector<8x64xf32>
    %43 = arith.mulf %42, %39 : vector<8x64xf32>
    %44 = arith.select %41, %39, %43 : vector<8x64xi1>, vector<8x64xf32>
    %c0_21 = arith.constant 0 : index
    %c0_22 = arith.constant 0 : index
    %c0_23 = arith.constant 0 : index
    %45 = vector.load %arg7[%c0_21, %c0_22, %c0_23] : memref<1x8x64xf32, #tpu.memory_space<vmem>>, vector<1x8x64xf32>
    %46 = vector.shape_cast %45 : vector<1x8x64xf32> to vector<8x64xf32>
    %47 = vector.shape_cast %44 : vector<8x64xf32> to vector<1x8x64xf32>
    tpu.vector_store %arg7[%c0_21, %c0_22, %c0_23], %47 {strides = array<i32>} : memref<1x8x64xf32, #tpu.memory_space<vmem>>, vector<1x8x64xf32>,
    return
  }
  func.func @transform_0(%arg0: i32, %arg1: i32) -> (i32, i32, i32) {
    %c0_i32 = arith.constant 0 : i32
    %c0_i32_0 = arith.constant 0 : i32
    return %arg0, %arg1, %c0_i32 : i32, i32, i32
  }
  func.func @transform_1(%arg0: i32, %arg1: i32) -> (i32, i32, i32) {
    %c1_i32 = arith.constant 1 : i32
    %0 = arith.muli %arg1, %c1_i32 : i32
    %c1_i32_0 = arith.constant 1 : i32
    %1 = arith.subi %0, %c1_i32_0 : i32
    %c0_i32 = arith.constant 0 : i32
    %2 = arith.maxsi %1, %c0_i32 : i32
    %c0_i32_1 = arith.constant 0 : i32
    %c0_i32_2 = arith.constant 0 : i32
    return %arg0, %2, %c0_i32_1 : i32, i32, i32
  }
  func.func @transform_2(%arg0: i32, %arg1: i32) -> (i32, i32, i32) {
    %c1_i32 = arith.constant 1 : i32
    %0 = arith.addi %arg1, %c1_i32 : i32
    %c1_i32_0 = arith.constant 1 : i32
    %1 = arith.muli %0, %c1_i32_0 : i32
    %c1_i32_1 = arith.constant 1 : i32
    %2 = arith.minsi %1, %c1_i32_1 : i32
    %c0_i32 = arith.constant 0 : i32
    %c0_i32_2 = arith.constant 0 : i32
    return %arg0, %2, %c0_i32 : i32, i32, i32
  }
  func.func @transform_3(%arg0: i32, %arg1: i32) -> (i32, i32, i32) {
    %c0_i32 = arith.constant 0 : i32
    %c0_i32_0 = arith.constant 0 : i32
    %c0_i32_1 = arith.constant 0 : i32
    %c0_i32_2 = arith.constant 0 : i32
    return %c0_i32, %c0_i32_0, %c0_i32_1 : i32, i32, i32
  }
  func.func @transform_4(%arg0: i32, %arg1: i32) -> (i32, i32) {
    %c0_i32 = arith.constant 0 : i32
    %c0_i32_0 = arith.constant 0 : i32
    %c0_i32_1 = arith.constant 0 : i32
    return %c0_i32, %c0_i32_0 : i32, i32
  }
  func.func @transform_5(%arg0: i32, %arg1: i32) -> (i32, i32, i32) {
    %c0_i32 = arith.constant 0 : i32
    %c0_i32_0 = arith.constant 0 : i32
    return %arg0, %arg1, %c0_i32 : i32, i32, i32
  }
}

</mosaic_0001>

<bundles_post_ra>
// kernel: tile.8
= control target key start
LH: loop header
LB: loop body
LE: loop exit
PB: predicated region body
PF: predicated region fallthrough
CT: control target
= control target key end

     0   :  { %s28_s0 = inlined_call_operand.vmem [shape: f32[4], index: 0, kind: input, shape index: {}]   ;;  %s29_s1 = inlined_call_operand.vmem [shape: f32[16,4], index: 1, kind: output, shape index: {}]  }
   0x1   :  { %v4_v0 = vld [vmem:[%s28_s0] ss:$0 sm:$0xff] }
   0x2   :  { %5 = vst [vmem:[%s29_s1] sm:$0xff] %v4_v0  ;;  %8 = vst [vmem:[%s29_s1 + $0x8] sm:$0xff] %v4_v0 }

// kernel: tile.9
= control target key start
LH: loop header
LB: loop body
LE: loop exit
PB: predicated region body
PF: predicated region fallthrough
CT: control target
= control target key end

     0   :  { %s133_s10 = smov 60   ;;  %s134_s11 = smov 52   ;;  %vm3_vm0 = vcmask 31744   ;;  %vm9_vm1 = vcmask 523744   ;;  %vm15_vm2 = vcmask 490944   ;;  %vm21_vm3 = vcmask 458144   ;;  %s209_s0 = inlined_call_operand.vmem [shape: f32[16,4], index: 0, kind: input, shape index: {}]   ;;  %s210_s1 = inlined_call_operand.vmem [shape: f32[1,64], index: 1, kind: output, shape index: {}]  }
   0x1   :  { %v103_v0 = vld [vmem:[%s209_s0 + $0xf] sm:$0x1]   ;;  %v105_v1 = vld [vmem:[%s209_s0 + $0xd] sm:$0x1]   ;;  %v104_v2 = vld [vmem:[%s209_s0 + $0xe] sm:$0x1]  }
   0x2   :  { %7 = vrot.lane.b32.xlu0 %v103_v0, %s133_s10  ;;  %19 = vrot.lane.b32.xlu1 %v105_v1, %s134_s11  ;;  %v106_v3 = vld [vmem:[%s209_s0 + $0xc] sm:$0x1]   ;;  %s135_s16 = smov 56   ;;  %s136_s17 = smov 48   ;;  %v107_v4 = vld [vmem:[%s209_s0 + $0xb] sm:$0x1]  }
   0x3   :  { %v108_v5 = vld [vmem:[%s209_s0 + $0xa] sm:$0x1]   ;;  %v2_v6 = vld [vmem:[%s209_s0] sm:$0x1]   ;;  %s137_s24 = smov 44   ;;  %s138_s25 = smov 40  }
   0x4   :  { %4 = vst.msk [vmem:[#allocation0] sm:$0x1] %vm3_vm0, %v2_v6   ;;  %v109_v7 = vld [vmem:[%s209_s0 + $0x9] sm:$0x1]   ;;  %v110_v8 = vld [vmem:[%s209_s0 + $0x8] sm:$0x1]  }
   0x5   :  { %s139_s30 = smov 36   ;;  %s140_s2 = smov 32   ;;  %v111_v9 = vld [vmem:[%s209_s0 + $0x7] sm:$0x1]   ;;  %v112_v10 = vld [vmem:[%s209_s0 + $0x6] sm:$0x1]  }
   0x6   :  { %13 = vrot.lane.b32.xlu0 %v104_v2, %s135_s16  ;;  %25 = vrot.lane.b32.xlu1 %v106_v3, %s136_s17  ;;  %s141_s7 = smov 28   ;;  %s142_s8 = smov 24   ;;  %v113_v11 = vld [vmem:[%s209_s0 + $0x5] sm:$0x1]   ;;  %v114_v12 = vld [vmem:[%s209_s0 + $0x4] sm:$0x1]  }
   0x7   :  { %s143_s13 = smov 20   ;;  %s144_s14 = smov 16   ;;  %v115_v13 = vld [vmem:[%s209_s0 + $0x3] sm:$0x1]   ;;  %v116_v14 = vld [vmem:[%s209_s0 + $0x2] sm:$0x1]  }
   0x8   :  { %s145_s19 = smov 12   ;;  %s146_s20 = smov 8   ;;  %v117_v15 = vld [vmem:[%s209_s0 + $0x1] sm:$0x1]   ;;  %vm27_vm4 = vcmask 425344   ;;  %vm33_vm5 = vcmask 392544  }
   0x9   :  { %s147_s0 = smov 4   ;;  %vm39_vm6 = vcmask 359744   ;;  %vm45_vm7 = vcmask 326944   ;;  %vm51_vm8 = vcmask 294144   ;;  %vm57_vm9 = vcmask 261344  }
   0xa   :  { %31 = vrot.lane.b32.xlu0 %v107_v4, %s137_s24  ;;  %37 = vrot.lane.b32.xlu1 %v108_v5, %s138_s25  ;;  %vm63_vm10 = vcmask 228544   ;;  %vm69_vm11 = vcmask 195744   ;;  %vm75_vm12 = vcmask 162944   ;;  %vm81_vm13 = vcmask 130144  }
   0xb   :  { %vm87_vm14 = vcmask 97344   ;;  %vm93_vm15 = vcmask 64544  }
   0xe   :  { %43 = vrot.lane.b32.xlu0 %v109_v7, %s139_s30  ;;  %49 = vrot.lane.b32.xlu1 %v110_v8, %s140_s2 }
  0x12   :  { %55 = vrot.lane.b32.xlu0 %v111_v9, %s141_s7  ;;  %61 = vrot.lane.b32.xlu1 %v112_v10, %s142_s8 }
  0x16   :  { %67 = vrot.lane.b32.xlu0 %v113_v11, %s143_s13  ;;  %73 = vrot.lane.b32.xlu1 %v114_v12, %s144_s14 }
  0x1a   :  { %79 = vrot.lane.b32.xlu0 %v115_v13, %s145_s19  ;;  %85 = vrot.lane.b32.xlu1 %v116_v14, %s146_s20 }
  0x1e   :  { %91 = vrot.lane.b32.xlu0 %v117_v15, %s147_s0 }
  0x74   :  { %v8_v16 = vpop.permute.xlu0 %7   ;;  %v20_v17 = vpop.permute.xlu1 %19  }
  0x75   :  { %10 = vst.msk [vmem:[#allocation0] sm:$0x1] %vm9_vm1, %v8_v16  }
  0x78   :  { %v14_v18 = vpop.permute.xlu0 %13   ;;  %v26_v19 = vpop.permute.xlu1 %25  }
  0x79   :  { %16 = vst.msk [vmem:[#allocation0] sm:$0x1] %vm15_vm2, %v14_v18  }
  0x7a   :  { %22 = vst.msk [vmem:[#allocation0] sm:$0x1] %vm21_vm3, %v20_v17  }
  0x7b   :  { %28 = vst.msk [vmem:[#allocation0] sm:$0x1] %vm27_vm4, %v26_v19  }
  0x7c   :  { %v32_v20 = vpop.permute.xlu0 %31   ;;  %v38_v21 = vpop.permute.xlu1 %37  }
  0x7d   :  { %34 = vst.msk [vmem:[#allocation0] sm:$0x1] %vm33_vm5, %v32_v20  }
  0x7e   :  { %40 = vst.msk [vmem:[#allocation0] sm:$0x1] %vm39_vm6, %v38_v21  }
  0x80   :  { %v44_v22 = vpop.permute.xlu0 %43   ;;  %v50_v23 = vpop.permute.xlu1 %49  }
  0x81   :  { %46 = vst.msk [vmem:[#allocation0] sm:$0x1] %vm45_vm7, %v44_v22  }
  0x82   :  { %52 = vst.msk [vmem:[#allocation0] sm:$0x1] %vm51_vm8, %v50_v23  }
  0x84   :  { %v56_v24 = vpop.permute.xlu0 %55   ;;  %v62_v25 = vpop.permute.xlu1 %61  }
  0x85   :  { %58 = vst.msk [vmem:[#allocation0] sm:$0x1] %vm57_vm9, %v56_v24  }
  0x86   :  { %64 = vst.msk [vmem:[#allocation0] sm:$0x1] %vm63_vm10, %v62_v25  }
  0x88   :  { %v68_v26 = vpop.permute.xlu0 %67   ;;  %v74_v27 = vpop.permute.xlu1 %73  }
  0x89   :  { %70 = vst.msk [vmem:[#allocation0] sm:$0x1] %vm69_vm11, %v68_v26  }
  0x8a   :  { %76 = vst.msk [vmem:[#allocation0] sm:$0x1] %vm75_vm12, %v74_v27  }
  0x8c   :  { %v80_v28 = vpop.permute.xlu0 %79   ;;  %v86_v29 = vpop.permute.xlu1 %85  }
  0x8d   :  { %82 = vst.msk [vmem:[#allocation0] sm:$0x1] %vm81_vm13, %v80_v28  }
  0x8e   :  { %88 = vst.msk [vmem:[#allocation0] sm:$0x1] %vm87_vm14, %v86_v29  }
  0x90   :  { %v92_v30 = vpop.permute.xlu0 %91  }
  0x91   :  { %94 = vst.msk [vmem:[#allocation0] sm:$0x1] %vm93_vm15, %v92_v30  }
  0x98   :  { %v99_v31 = vld [vmem:[#allocation0] sm:$0x1] }
  0x99   :  { %102 = vst [vmem:[%s210_s1] sm:$0x1] %v99_v31 }

// kernel: srb_forward_nhwc.1
= control target key start
LH: loop header
LB: loop body
LE: loop exit
PB: predicated region body
PF: predicated region fallthrough
CT: control target
= control target key end

     0   :  { %s993_s18 = smov 0   ;;  %s995_s19 = smov 0   ;;  %s1157_s0 = inlined_call_operand.vmem [shape: f32[2,16,64], index: 0, kind: input, shape index: {}, may-alias: {0,1,2}]   ;;  %s1158_s1 = inlined_call_operand.vmem [shape: f32[2,16,64], index: 1, kind: input, shape index: {}, may-alias: {0,1,2}]   ;;  %s1159_s2 = inlined_call_operand.vmem [shape: f32[2,16,64], index: 2, kind: input, shape index: {}, may-alias: {0,1,2}]   ;;  %s1160_s3 = inlined_call_operand.vmem [shape: bf16[3,64,64], index: 3, kind: input, shape index: {}]   ;;  %s1161_s4 = inlined_call_operand.vmem [shape: f32[1,64], index: 4, kind: input, shape index: {}]   ;;  %s1162_s5 = inlined_call_operand.vmem [shape: f32[2,16,64], index: 5, kind: output, shape index: {}]  }
   0x1   :  { %s997_s20 = smov 0   ;;  %s999_s21 = smov 0  }
   0x2   :  { %s1001_s22 = smov 0  }
   0x3 LB: > { %s24_s23 = sadd.s32 1, %s951_s20  ;;  %s27_s24 = sadd.s32 1, %s955_s21  ;;  %s959_s22 = sphi %s1001_s22, %s15_s22   ;;  %s955_s21 = sphi %s999_s21, %s1167_s21   ;;  %s951_s20 = sphi %s997_s20, %s1166_s20   ;;  %s947_s19 = sphi %s995_s19, %s1165_s19   ;;  %s943_s18 = sphi %s993_s18, %s1164_s18  }
   0x4   : > { %p25_p0 = scmp.ge.s32.totalorder %s24_s23, 2  ;;  %p762_p1 = scmp.ge.s32.totalorder %s959_s22, 1 }
   0x5   : > { %p260_p2 = scmp.lt.s32.totalorder %s959_s22, 5 }
   0x6   : > { %s1169_s23 = smov (%p25_p0, %s24_s23), 0  ;;  %s1171_s24 = smov (!%p25_p0, %s27_s24), %s955_s21 }
   0x7   : > { %p261_p3 = pnand %p762_p1, %p260_p2  ;;  %p29_p4 = scmp.ge.s32.totalorder %s1171_s24, 2 }
   0x8   : > { %p316_p5 = scmp.lt.s32.totalorder (!%p261_p3), %s947_s19, 1  ;;  %p318_p6 = scmp.lt.s32.totalorder (!%p261_p3), %s943_s18, 1 }
   0x9   : > { %s1173_s24 = smov (%p29_p4, %s1171_s24), 0  ;;  %264 = sbr.rel (%p261_p3) target bundleno = 250 (0xfa), region = 40 }
   0xa   : > { %s338_s15 = sadd.s32 (!%p261_p3), 1, %s943_s18  ;;  %s1076_s27 = sadd.s32 (!%p261_p3), 4294967295, %s943_s18 }
   0xb   : > { %p1067_p7 = scmp.lt.s32.totalorder (!%p261_p3), %s338_s15, 1  ;;  %p325_p8 = scmp.gt.s32.totalorder (!%p261_p3), %s1076_s27, 0 }
   0xc   : > { %p766_p9 = scmp.lt.s32.totalorder (!%p261_p3), %s1076_s27, 1  ;;  %p363_p10 = scmp.gt.s32.totalorder (!%p261_p3), %s943_s18, 0 }
   0xe   : > { %v909_v0 = vld [vmem:[%s1160_s3 + $0x38] sm:$0xff]   ;;  %v961_v1 = vmov 0.0   ;;  %v911_v3 = vld [vmem:[%s1160_s3 + $0x30] sm:$0xff]   ;;  %vm962_vm0 = vmmov 0   ;;  %s1175_s19 = smov (!%p316_p5, %s947_s19), 1  ;;  %v913_v5 = vld [vmem:[%s1160_s3 + $0x28] sm:$0xff]  }
   0xf   : > { %831 = vmatprep.subr.bf16.mxu0 %v961_v1  ;;  %843 = vmatprep.subr.bf16.mxu1 %v961_v1  ;;  %v910_v2 = vld [vmem:[%s1160_s3 + $0x18] sm:$0xff]   ;;  %v912_v4 = vld [vmem:[%s1160_s3 + $0x10] sm:$0xff]   ;;  %s319_s8 = scalar_select %p318_p6, %s943_s18, 1  ;;  %v914_v6 = vld [vmem:[%s1160_s3 + $0x8] sm:$0xff]   ;;  %vm432_vm1 = vcmask 523264   ;;  %vm387_vm2 = vcmask 1046528  }
  0x10   : > { %832 = vmatpush3.bf16.msra.mxu0 %v909_v0  ;;  %839 = vmatprep.mubr.msk.bf16.mxu0 %vm962_vm0, %v961_v1  ;;  %s1056_s11 = sshll.u32 %s1175_s19, 1  ;;  %v915_v7 = vld [vmem:[%s1160_s3 + $0x20] sm:$0xff]   ;;  %s1177_s15 = smov (!%p1067_p7, %s338_s15), 1  ;;  %v917_v11 = vld [vmem:[%s1160_s3 + $0x58] sm:$0xff]   ;;  %v918_v14 = vld [vmem:[%s1160_s3 + $0x50] sm:$0xff]   ;;  %vm380_vm3 = vcmask 1040384  }
  0x11   : > { %844 = vmatpush3.bf16.msra.mxu1 %v910_v2  ;;  %833 = vmatprep.subr.bf16.mxu0 %v961_v1  ;;  %s321_s14 = sadd.s32 %s1056_s11, %s319_s8  ;;  %v916_v8 = vld [vmem:[%s1160_s3] sm:$0xff]   ;;  %s1179_s15 = smov (!%p1067_p7, %s1177_s15), 1  ;;  %v919_v18 = vld [vmem:[%s1160_s3 + $0x48] sm:$0xff]  }
  0x12   : > { %845 = vmatprep.subr.bf16.mxu1 %v961_v1  ;;  %851 = vmatprep.mubr.msk.bf16.mxu1 %vm962_vm0, %v961_v1  ;;  %s1065_s16 = sshll.u32 %s321_s14, 3  ;;  %s346_s8 = sadd.s32 %s1056_s11, %s1179_s15  ;;  %v920_v23 = vld [vmem:[%s1160_s3 + $0x40] sm:$0xff]  }
  0x13   : > { %s323_s26 = scalar_lea.vmem %s1157_s0, %s1065_s16  ;;  %s777_s12 = sshll.u32 %s346_s8, 3  ;;  %v811_v37 = vld [vmem:[%s1161_s4] ss:$0 sm:$0xff] }
  0x14   : > { %834 = vmatpush3.bf16.msra.mxu0 %v911_v3  ;;  %s370_s7 = scalar_select %p318_p6, 1, 0  ;;  %v1092_v9 = vld [vmem:[%s323_s26] sm:$0xff] }
  0x15   : > { %846 = vmatpush3.bf16.msra.mxu1 %v912_v4  ;;  %835 = vmatprep.subr.bf16.mxu0 %v961_v1  ;;  %v398_v10 = vpack.c.bf16 %v1092_v9, %v1092_v9  ;;  %s348_s19 = scalar_lea.vmem %s1159_s2, %s777_s12  ;;  %v382_v16 = vrot.slane %v1092_v9, 1  ;;  %v378_v22 = vrot.slane %v1092_v9, 7 }
  0x16   : > { %847 = vmatprep.subr.bf16.mxu1 %v961_v1  ;;  %s371_s13 = scvt.s32.f32 %s370_s7  ;;  %v368_v12 = vld [vmem:[%s348_s19] sm:$0xff]  ;;  %s359_s19 = scalar_lea.vmem %s1162_s5, %s1065_s16 }
  0x17   : > { %s326_s15 = scalar_select %p325_p8, %s1076_s27, 0 }
  0x18   : > { %836 = vmatpush3.bf16.msra.mxu0 %v913_v5  ;;  %v372_v13 = vstv %s371_s13  ;;  %s364_s18 = scalar_select %p363_p10, 1, 0 }
  0x19   : > { %848 = vmatpush3.bf16.msra.mxu1 %v914_v6  ;;  %837 = vmatprep.subr.bf16.mxu0 %v961_v1  ;;  %v373_v15 = vmul.f32 %v372_v13, %v368_v12  ;;  %s1181_s15 = smov (!%p766_p9, %s326_s15), 1 }
  0x1a   : > { %849 = vmatprep.subr.bf16.mxu1 %v961_v1  ;;  %s365_s28 = scvt.s32.f32 %s364_s18  ;;  %s332_s29 = sadd.s32 %s1181_s15, %s1056_s11 }
  0x1b   : > { %s772_s30 = sshll.u32 %s332_s29, 3  ;;  %v385_v19 = vrot.slane %v373_v15, 1 }
  0x1c   : > { %838 = vmatpush3.bf16.msra.mxu0 %v915_v7  ;;  %v366_v17 = vstv %s365_s28  ;;  %s334_s10 = scalar_lea.vmem %s1158_s1, %s772_s30 }
  0x1d   : > { %850 = vmatpush3.bf16.msra.mxu1 %v916_v8  ;;  %855 = vmatprep.subr.bf16.mxu0 %v961_v1  ;;  %v362_v20 = vld [vmem:[%s334_s10] sm:$0xff]  ;;  %v388_v24 = vsel %vm387_vm2, %v382_v16, %v385_v19 }
  0x1e   : > { %v367_v21 = vmul.f32 %v366_v17, %v362_v20  ;;  %v543_v27 = vpack.c.bf16 %v388_v24, %v388_v24 }
  0x1f   : > { %840 = vmatmul.mubr.msk.bf16.vlgmr.msra.gmra.mxu0 %vm432_vm1, %v398_v10 }
  0x20   : > { %856 = vmatpush3.bf16.msra.mxu0 %v917_v11  ;;  %863 = vmatprep.mubr.msk.bf16.mxu0 %vm962_vm0, %v961_v1  ;;  %v375_v25 = vrot.slane %v367_v21, 7 }
  0x21   : > { %857 = vmatprep.subr.bf16.mxu0 %v961_v1 }
  0x22   : > { %v381_v26 = vsel %vm380_vm3, %v375_v25, %v378_v22 }
  0x23   : > { %v389_v28 = vpack.c.bf16 %v381_v26, %v381_v26 }
  0x24   : > { %858 = vmatpush3.bf16.msra.mxu0 %v918_v14 }
  0x25   : > { %859 = vmatprep.subr.bf16.mxu0 %v961_v1  ;;  %852 = vmatmul.mubr.msk.bf16.vlgmr.msra.gmra.mxu1 %vm432_vm1, %v389_v28 }
  0x28   : > { %860 = vmatpush3.bf16.msra.mxu0 %v919_v18 }
  0x29   : > { %861 = vmatprep.subr.bf16.mxu0 %v961_v1 }
  0x2c   : > { %862 = vmatpush3.bf16.msra.mxu0 %v920_v23 }
  0x2f   : > { %864 = vmatmul.mubr.msk.bf16.vlgmr.msra.gmra.mxu0 %vm432_vm1, %v543_v27 }
  0xdf   : > { %v470_v29 = vpop.f32.mrf.mxu0 }
  0xe1   : > { %v841_v30 = vpop.f32.mrf.mxu0 }
  0xe3   : > { %v473_v31 = vpop.f32.mrf.mxu0 }
  0xe5   : > { %v842_v32 = vpop.f32.mrf.mxu0  ;;  %v537_v33 = vpop.f32.mrf.mxu1 }
  0xe6   : > { %v538_v34 = vadd.f32 %v537_v33, %v470_v29 }
  0xe7   : > { %v853_v36 = vpop.f32.mrf.mxu1 }
  0xe9   : > { %v540_v40 = vpop.f32.mrf.mxu1 }
  0xeb   : > { %v854_v43 = vpop.f32.mrf.mxu1 }
  0xef   : > { %v614_v35 = vpop.f32.mrf.mxu0 }
  0xf0   : > { %v620_v38 = vadd.f32 %v614_v35, %v538_v34 }
  0xf1   : > { %v865_v39 = vpop.f32.mrf.mxu0 }
  0xf2   : > { %v628_v41 = vadd.f32 %v811_v37, %v620_v38 }
  0xf3   : > { %v617_v42 = vpop.f32.mrf.mxu0 }
  0xf4   : > { %v629_v44 = vadd.f32 %v628_v41, %v1092_v9 }
  0xf5   : > { %v866_v45 = vpop.f32.mrf.mxu0 }
  0xf6   : > { %vm630_vm4 = vcmp.ge.f32.partialorder %v629_v44, 0.0  ;;  %v631_v46 = vmul.f32 0.05, %v629_v44 }
  0xf8   : > { %v632_v47 = vsel %vm630_vm4, %v629_v44, %v631_v46 }
  0xf9   : > { %633 = vst.msk [vmem:[%s359_s19] sm:$0xff] %vm432_vm1, %v632_v47 }
  0xfa PF: > { %s15_s22 = sadd.s32 1, %s959_s22   ;;  %s1164_s18 = smov %s951_s20 }
  0xfb   : > { %p12_p11 = scmp.ge.s32.totalorder %s15_s22, 6   ;;  %s1165_s19 = smov %s955_s21 }
  0xfc   : > { %s1166_s20 = smov %s1169_s23  ;;  %s1167_s21 = smov %s1173_s24 }
  0xfd   :  { %14 = sbr.rel (!%p12_p11) target bundleno = 3 (0x3), region = 78 }

</bundles_post_ra>
